<compile_context>
chip_gen: v7x
topology: tpu7x:2x2x1
jax: 0.10.0
libtpu: 0.0.40
codegen_flags: <defaults>
</compile_context>

<pallas_src>
import functools

import jax
import jax.numpy as jnp
from jax.experimental import pallas as pl
from jax.experimental.pallas import tpu as pltpu

# --- model hyperparameters (from the PyTorch module) -------------------------
block_size = 8
n_embd = 32
vocab_size = 65        # e.g. tiny-shakespeare char vocab (synthetic choice)

_LANE = 128
_SUBLANE = 8
_MAX_ROW_BLOCK = 256   # rows per grid step once B*T gets large


def _round_up(x, m):
    return ((x + m - 1) // m) * m


def _bigram_kernel(T, x_ref, table_ref, pos_ref, out_ref):
    """One row tile of the fused bigram forward.

    x_ref     : (RB, 1)        int32  flattened token ids for this row tile
    table_ref : (V_pad, V_pad) bf16   fused  tok_emb @ W^T + b   (resident)
    pos_ref   : (Tp, V_pad)    bf16   fused  pos_emb @ W^T       (resident)
    out_ref   : (RB, V_pad)    f32    logits for this row tile
    """
    RB = x_ref.shape[0]
    V_pad = table_ref.shape[1]
    Tp = pos_ref.shape[0]

    # Token one-hot (RB, V_pad) in bf16 (0/1 values are exact).
    # NOTE: out-of-range token ids yield an all-zero row (zero logits) instead
    # of erroring like nn.Embedding.
    x_col = x_ref[...]                                               # (RB, 1)
    vocab_iota = jax.lax.broadcasted_iota(jnp.int32, (1, V_pad), 1)
    onehot_tok = (x_col == vocab_iota).astype(table_ref.dtype)

    # Position one-hot: global output row r corresponds to position t = r % T.
    row0 = pl.program_id(0) * RB
    row_ids = row0 + jax.lax.broadcasted_iota(jnp.int32, (RB, 1), 0)
    if T & (T - 1) == 0:            # power of two (true for block_size = 8)
        t_ids = row_ids & (T - 1)
    else:
        t_ids = row_ids % T
    pos_iota = jax.lax.broadcasted_iota(jnp.int32, (1, Tp), 1)
    onehot_pos = (t_ids == pos_iota).astype(pos_ref.dtype)           # (RB, Tp)

    # Fused gather-matmuls on the MXU, f32 accumulation; lane-dense f32 store.
    logits = jnp.dot(onehot_tok, table_ref[...],
                     preferred_element_type=jnp.float32)
    logits = logits + jnp.dot(onehot_pos, pos_ref[...],
                              preferred_element_type=jnp.float32)
    out_ref[...] = logits


def bigram_forward(x, tok_emb, pos_emb, w_head, b_head):
    """Forward pass of BigramLanguageModel (targets=None).

    x       : (B, T) int token indices, T <= block_size
    tok_emb : (vocab_size, n_embd)   token_embedding.weight
    pos_emb : (block_size, n_embd)   position_embedding.weight
    w_head  : (vocab_size, n_embd)   lm_head.weight (PyTorch layout)
    b_head  : (vocab_size,)          lm_head.bias
    Returns (logits (B, T, vocab_size) float32, loss=None).
    """
    B, T = x.shape
    V, C = tok_emb.shape
    V_pad = _round_up(V, _LANE)

    # --- one-time algebraic fusion (wrapper side, plain XLA) -----------------
    # logits[b, t] = (tok_emb[x] + pos_emb[t]) @ W^T + b
    #             = (tok_emb @ W^T + b)[x]  +  (pos_emb @ W^T)[t]
    table_f32 = tok_emb @ w_head.T + b_head[None, :]                 # (V, V)
    pos_f32 = pos_emb @ w_head.T                                     # (block_size, V)
    table = (jnp.zeros((V_pad, V_pad), jnp.float32)
             .at[:V, :V].set(table_f32).astype(jnp.bfloat16))
    pos_table = (jnp.zeros((pos_emb.shape[0], V_pad), jnp.float32)
                 .at[:, :V].set(pos_f32).astype(jnp.bfloat16))
    # TODO(synk): at realistic vocab sizes (tens of thousands) the V_pad x V_pad
    # table no longer fits VMEM (esp. v7x's 64 MiB); switch to a row-gather +
    # tiled lm_head design instead of the fused table.

    # --- row tiling: flatten (B, T) -> rows, pad to the tile size ------------
    rows = B * T
    row_block = min(_MAX_ROW_BLOCK, _round_up(rows, _SUBLANE))
    rows_pad = _round_up(rows, row_block)
    x_flat = (jnp.zeros((rows_pad, 1), jnp.int32)
              .at[:rows, 0].set(x.reshape(rows).astype(jnp.int32)))

    grid = (rows_pad // row_block,)
    kernel = functools.partial(_bigram_kernel, T)

    logits_pad = pl.pallas_call(
        kernel,
        out_shape=jax.ShapeDtypeStruct((rows_pad, V_pad), jnp.float32),
        grid=grid,
        in_specs=[
            pl.BlockSpec((row_block, 1), lambda i: (i, 0)),               # pipelined ids
            pl.BlockSpec((V_pad, V_pad), lambda i: (0, 0)),               # resident table
            pl.BlockSpec((pos_table.shape[0], V_pad), lambda i: (0, 0)),  # resident pos
        ],
        out_specs=pl.BlockSpec((row_block, V_pad), lambda i: (i, 0)),
        compiler_params=pltpu.CompilerParams(
            dimension_semantics=("parallel",)),
    )(x_flat, table, pos_table)

    # Un-pad (padded vocab columns / rows sliced off) and reshape wrapper-side.
    logits = logits_pad[:rows, :V].reshape(B, T, V)
    # TODO(synk): cross-entropy loss path (targets is not None) not implemented.
    return logits, None


def reference_forward(x, tok_emb, pos_emb, w_head, b_head):
    """Pure-JAX f32 reference mirroring the PyTorch forward (targets=None)."""
    B, T = x.shape
    tok = tok_emb[x]                          # (B, T, C)
    pos = pos_emb[:T]                         # (T, C)
    h = tok + pos[None, :, :]
    return h @ w_head.T + b_head[None, None, :]


if __name__ == "__main__":
    key = jax.random.PRNGKey(0)
    k_tok, k_pos, k_w, k_b, k_x = jax.random.split(key, 5)

    # deterministic parameter init (synthetic, nn.Module-shaped)
    tok_emb = jax.random.normal(k_tok, (vocab_size, n_embd), jnp.float32)
    pos_emb = jax.random.normal(k_pos, (block_size, n_embd), jnp.float32)
    # nn.Linear(n_embd, vocab_size): weight (V, C), bias (V,)
    w_head = jax.random.normal(k_w, (vocab_size, n_embd), jnp.float32) * 0.02
    b_head = jax.random.normal(k_b, (vocab_size,), jnp.float32) * 0.02

    # small example input: batch=2, seq=block_size=8
    B, T = 2, block_size
    x = jax.random.randint(k_x, (B, T), 0, vocab_size, dtype=jnp.int32)

    logits, loss = bigram_forward(x, tok_emb, pos_emb, w_head, b_head)
    logits = jax.block_until_ready(logits)

    ref = reference_forward(x, tok_emb, pos_emb, w_head, b_head)
    assert logits.shape == (B, T, vocab_size)
    assert loss is None
    # bf16 MXU operands (f32 accumulate) -> bf16-level tolerance vs f32 reference
    assert jnp.allclose(logits, ref, atol=1e-2, rtol=1e-2), (
        float(jnp.max(jnp.abs(logits - ref))))

    print("KERNEL_OK")
</pallas_src>

<mosaic_0001>
module attributes {stable_mosaic.version = 11 : i64} {
  func.func @_bigram_kernel(%arg0: i32, %arg1: memref<16x1xi32, #tpu.memory_space<vmem>>, %arg2: memref<128x128xbf16, #tpu.memory_space<vmem>>, %arg3: memref<8x128xbf16, #tpu.memory_space<vmem>>, %arg4: memref<16x128xf32, #tpu.memory_space<vmem>>) attributes {dimension_semantics = [#tpu.dimension_semantics<parallel>], iteration_bounds = array<i64: 1>, scalar_prefetch = 0 : i64, scratch_operands = 0 : i64, tpu.core_type = #tpu.core_type<tc>, window_params = [{transform_indices = @transform_0, window_bounds = array<i64: 16, 1>}, {pipeline_mode = #tpu.pipeline_mode<synchronous>, transform_indices = @transform_1, window_bounds = array<i64: 128, 128>}, {pipeline_mode = #tpu.pipeline_mode<synchronous>, transform_indices = @transform_2, window_bounds = array<i64: 8, 128>}, {transform_indices = @transform_3, window_bounds = array<i64: 16, 128>}]} {
    %c0 = arith.constant 0 : index
    %c0_0 = arith.constant 0 : index
    %0 = vector.load %arg1[%c0, %c0_0] : memref<16x1xi32, #tpu.memory_space<vmem>>, vector<16x1xi32>
    %1 = tpu.iota {dimensions = array<i32: 1>} : vector<1x128xi32>
    %2 = vector.broadcast %0 : vector<16x1xi32> to vector<16x128xi32>
    %3 = vector.broadcast %1 : vector<1x128xi32> to vector<16x128xi32>
    %4 = arith.cmpi eq, %2, %3 : vector<16x128xi32>
    %5 = arith.extui %4 : vector<16x128xi1> to vector<16x128xi32>
    %6 = arith.sitofp %5 : vector<16x128xi32> to vector<16x128xf32>
    %7 = arith.truncf %6 : vector<16x128xf32> to vector<16x128xbf16>
    %c16_i32 = arith.constant 16 : i32
    %8 = arith.muli %arg0, %c16_i32 : i32
    %9 = tpu.iota {dimensions = array<i32: 0>} : vector<16x1xi32>
    %10 = vector.broadcast %8 : i32 to vector<16x1xi32>
    %11 = arith.addi %10, %9 : vector<16x1xi32>
    %c7_i32 = arith.constant 7 : i32
    %12 = vector.broadcast %c7_i32 : i32 to vector<16x1xi32>
    %13 = arith.andi %11, %12 : vector<16x1xi32>
    %14 = tpu.iota {dimensions = array<i32: 1>} : vector<1x8xi32>
    %15 = vector.broadcast %13 : vector<16x1xi32> to vector<16x8xi32>
    %16 = vector.broadcast %14 : vector<1x8xi32> to vector<16x8xi32>
    %17 = arith.cmpi eq, %15, %16 : vector<16x8xi32>
    %18 = arith.extui %17 : vector<16x8xi1> to vector<16x8xi32>
    %19 = arith.sitofp %18 : vector<16x8xi32> to vector<16x8xf32>
    %20 = arith.truncf %19 : vector<16x8xf32> to vector<16x8xbf16>
    %c0_1 = arith.constant 0 : index
    %c0_2 = arith.constant 0 : index
    %21 = vector.load %arg2[%c0_1, %c0_2] : memref<128x128xbf16, #tpu.memory_space<vmem>>, vector<128x128xbf16>
    %cst = arith.constant dense<0.000000e+00> : vector<16x128xf32>
    %22 = tpu.matmul %7, %21, %cst {dimension_numbers = #tpu.dot_dimension_numbers<[1], [0], [0], [1], [0, 0, 1, 1], [], []>} : vector<16x128xbf16>, vector<128x128xbf16>, vector<16x128xf32> -> vector<16x128xf32>
    %c0_3 = arith.constant 0 : index
    %c0_4 = arith.constant 0 : index
    %23 = vector.load %arg3[%c0_3, %c0_4] : memref<8x128xbf16, #tpu.memory_space<vmem>>, vector<8x128xbf16>
    %cst_5 = arith.constant dense<0.000000e+00> : vector<16x128xf32>
    %24 = tpu.matmul %20, %23, %cst_5 {dimension_numbers = #tpu.dot_dimension_numbers<[1], [0], [0], [1], [0, 0, 1, 1], [], []>} : vector<16x8xbf16>, vector<8x128xbf16>, vector<16x128xf32> -> vector<16x128xf32>
    %25 = arith.addf %22, %24 : vector<16x128xf32>
    %c0_6 = arith.constant 0 : index
    %c0_7 = arith.constant 0 : index
    %26 = vector.load %arg4[%c0_6, %c0_7] : memref<16x128xf32, #tpu.memory_space<vmem>>, vector<16x128xf32>
    tpu.vector_store %arg4[%c0_6, %c0_7], %25 {strides = array<i32>} : memref<16x128xf32, #tpu.memory_space<vmem>>, vector<16x128xf32>,
    return
  }
  func.func @transform_0(%arg0: i32) -> (i32, i32) {
    %c0_i32 = arith.constant 0 : i32
    %c0_i32_0 = arith.constant 0 : i32
    return %arg0, %c0_i32 : i32, i32
  }
  func.func @transform_1(%arg0: i32) -> (i32, i32) {
    %c0_i32 = arith.constant 0 : i32
    %c0_i32_0 = arith.constant 0 : i32
    %c0_i32_1 = arith.constant 0 : i32
    return %c0_i32, %c0_i32_0 : i32, i32
  }
  func.func @transform_2(%arg0: i32) -> (i32, i32) {
    %c0_i32 = arith.constant 0 : i32
    %c0_i32_0 = arith.constant 0 : i32
    %c0_i32_1 = arith.constant 0 : i32
    return %c0_i32, %c0_i32_0 : i32, i32
  }
  func.func @transform_3(%arg0: i32) -> (i32, i32) {
    %c0_i32 = arith.constant 0 : i32
    %c0_i32_0 = arith.constant 0 : i32
    return %arg0, %c0_i32 : i32, i32
  }
}

</mosaic_0001>

<bundles_post_ra>
// kernel: tpu_custom_call.1
= control target key start
LH: loop header
LB: loop body
LE: loop exit
PB: predicated region body
PF: predicated region fallthrough
CT: control target
= control target key end

     0   :  { %8 = vsyncpa [#allocation3], 0  ;;  %s421_s0 = inlined_call_operand.vmem [shape: s32[16,1], index: 0, kind: input, shape index: {}]   ;;  %s422_s1 = inlined_call_operand.hbm [shape: bf16[128,128], index: 1, kind: input, shape index: {}]   ;;  %s423_s2 = inlined_call_operand.vmem [shape: bf16[8,128], index: 2, kind: input, shape index: {}]   ;;  %s424_s3 = inlined_call_operand.hbm [shape: f32[16,128], index: 3, kind: output, shape index: {}]  }
   0x1   :  { %9 = vsyncpa [#allocation4], 0  ;;  %s358_s12 = smov [#allocation2]   ;;  %s310_s16 = scalar_lea.hbm %s422_s1, 1024 }
   0x2   :  { %s17_s13 = sshll.u32 %s358_s12, 4  ;;  %p311_p0 = scmp.ne.s32.totalorder %s422_s1, %s310_s16  ;;  %s18_s13 = int_to_ptr.vmem [resolvable:$true] %s17_s13 }
   0x3   :  { %p314_p1 = scmp.lt.u32.totalorder %s310_s16, %s422_s1 }
   0x5   :  { %p316_p2 = pnand %p314_p1, %p311_p0 }
   0x7   :  { %319 = shalt.err (!%p316_p2)
}
   0x8   :  { %s320_s21 = scalar_lea.vmem %s18_s13, 1024  ;;  %p325_p4 = scmp.lt.s32.totalorder %s18_s13, %s18_s13 }
   0x9   :  { %p321_p3 = scmp.ne.s32.totalorder %s18_s13, %s320_s21  ;;  %p326_p5 = scmp.lt.s32.totalorder %s320_s21, %s320_s21 }
   0xb   :  { %p327_p6 = por %p326_p5, %p325_p4 }
   0xd   :  { %p328_p7 = pnand %p327_p6, %p321_p3 }
   0xf   :  { %331 = shalt.err (!%p328_p7)
}
  0x10   :  { %s359_s22 = smov 64   ;;  %s360_s23 = smov 4  }
  0x11   :  { %23 = dma.hbm_to_vmem [thread:$0]  %s422_s1, 1024, %s18_s13, [#allocation3], %s359_s22, %s359_s22, %s360_s23  }
  0x12   :  { %354 = dma.done.wait [#allocation3], 1024  }
  0x13   :  { %355 = vsyncadd [#allocation3], 4294966272  ;;  %v32_v0 = vlaneseq  ;;  %v361_v1 = vmov 0   ;;  %v362_v2 = vmov 0.0   ;;  %v30_v8 = vld [vmem:[%s421_s0] sm:$0xff]  ;;  %v302_v9 = vld [vmem:[#allocation2] sm:$0xff]  }
  0x14   :  { %301 = vset.pattern.permute.xlu0 %v361_v1  ;;  %269 = vmatprep.subr.bf16.mxu0 %v362_v2  ;;  %v31_v10 = vld [vmem:[%s421_s0 + $0x8] sm:$0xff]  ;;  %vm363_vm0 = vmmov 0   ;;  %v303_v11 = vld [vmem:[#allocation2 + $0x8] sm:$0xff]   ;;  %vm84_vm3 = vcmask 1043456   ;;  %vm80_vm4 = vcmask 64512   ;;  %v305_v18 = vld [vmem:[#allocation2 + $0x18] sm:$0xff]  }
  0x15   :  { %263 = vmatprep.subr.bf16.mxu1 %v362_v2  ;;  %v49_v3 = vshrl.u32 %v32_v0, 7  ;;  %v33_v5 = vand.u32 127, %v32_v0  ;;  %35 = vperm.xlu0 %301, %v30_v8   ;;  %v304_v14 = vld [vmem:[#allocation2 + $0x10] sm:$0xff]   ;;  %v79_v15 = vld [vmem:[%s423_s2] sm:$0xf]  ;;  %v306_v19 = vld [vmem:[#allocation2 + $0x20] sm:$0xff]  }
  0x16   :  { %265 = vmatprep.mubr.msk.bf16.mxu1 %vm363_vm0, %v362_v2  ;;  %285 = vmatprep.mubr.msk.bf16.mxu0 %vm363_vm0, %v362_v2  ;;  %v86_v16 = vsel %vm84_vm3, %v79_v15, 0  ;;  %v307_v20 = vld [vmem:[#allocation2 + $0x28] sm:$0xff]   ;;  %v308_v21 = vld [vmem:[#allocation2 + $0x30] sm:$0xff]   ;;  %v309_v22 = vld [vmem:[#allocation2 + $0x38] sm:$0xff]   ;;  %v364_v25 = vmov 1.0|1.0  }
  0x17   :  { %v50_v4 = vadd.s32 8, %v49_v3  ;;  %v54_v6 = vand.u32 7, %v49_v3  ;;  %270 = vmatpush3.bf16.msra.mxu0 %v302_v9  ;;  %264 = vmatpush3.bf16.msra.mxu1 %v86_v16  ;;  %s365_s0 = smov [#allocation5]  }
  0x18   :  { %271 = vmatprep.subr.bf16.mxu0 %v362_v2  ;;  %s225_s2 = sshll.u32 %s365_s0, 4  ;;  %s226_s2 = int_to_ptr.vmem [resolvable:$true] %s225_s2 }
  0x19   :  { %v55_v7 = vand.u32 7, %v50_v4  ;;  %vm56_vm1 = vcmp.eq.s32.totalorder %v54_v6, %v33_v5  ;;  %38 = vperm.xlu0 %301, %v31_v10   ;;  %s332_s4 = scalar_lea.vmem %s226_s2, 256  ;;  %p337_p9 = scmp.lt.s32.totalorder %s226_s2, %s226_s2 }
  0x1a   :  { %v239_v12 = vsel %vm56_vm1, 1.0, %v362_v2  ;;  %p333_p8 = scmp.ne.s32.totalorder %s226_s2, %s332_s4  ;;  %p338_p10 = scmp.lt.s32.totalorder %s332_s4, %s332_s4 }
  0x1b   :  { %vm57_vm2 = vcmp.eq.s32.totalorder %v55_v7, %v33_v5  ;;  %272 = vmatpush3.bf16.msra.mxu0 %v303_v11 }
  0x1c   :  { %v240_v13 = vsel %vm57_vm2, 1.0, %v362_v2  ;;  %273 = vmatprep.subr.bf16.mxu0 %v362_v2  ;;  %p339_p11 = por %p338_p10, %p337_p9 }
  0x1d   :  { %v62_v17 = vpack.c.bf16 %v240_v13, %v239_v12 }
  0x1e   :  { %p340_p12 = pnand %p339_p11, %p333_p8 }
  0x1f   :  { %274 = vmatpush3.bf16.msra.mxu0 %v304_v14  ;;  %266 = vmatmul.mubr.msk.bf16.vlgmr.msra.gmra.mrb[0].mxu1 %vm80_vm4, %v62_v17 }
  0x20   :  { %275 = vmatprep.subr.bf16.mxu0 %v362_v2 }
  0x23   :  { %276 = vmatpush3.bf16.msra.mxu0 %v305_v18 }
  0x24   :  { %277 = vmatprep.subr.bf16.mxu0 %v362_v2 }
  0x27   :  { %278 = vmatpush3.bf16.msra.mxu0 %v306_v19 }
  0x28   :  { %279 = vmatprep.subr.bf16.mxu0 %v362_v2 }
  0x2b   :  { %280 = vmatpush3.bf16.msra.mxu0 %v307_v20 }
  0x2c   :  { %281 = vmatprep.subr.bf16.mxu0 %v362_v2 }
  0x2f   :  { %282 = vmatpush3.bf16.msra.mxu0 %v308_v21 }
  0x30   :  { %283 = vmatprep.subr.bf16.mxu0 %v362_v2 }
  0x33   :  { %284 = vmatpush3.bf16.msra.mxu0 %v309_v22 }
  0x94   :  { %v36_v23 = vpop.permute.xlu0 %35 }
  0x95   :  { %vm40_vm5 = vcmp.eq.s32.totalorder %v36_v23, %v33_v5 }
  0x98   :  { %v39_v24 = vpop.permute.xlu0 %38 }
  0x99   :  { %vm41_vm6 = vcmp.eq.s32.totalorder %v39_v24, %v33_v5 }
  0x9a   :  { %vm250_vm7 = vmpackc.low %vm41_vm6, %vm40_vm5 }
  0x9b   :  { %286 = vmatmul.mubr.msk.bf16.vlgmr.msra.gmra.mrb[0].mxu0 %vm250_vm7, %v364_v25 }
  0xf2   :  { %v122_v26 = vpop.f32.mrb[0].mxu1 }
  0xf3   :  { %v267_v27 = vpop.f32.mrb[1].mxu1 }
  0xf4   :  { %v125_v28 = vpop.f32.mrb[2].mxu1 }
  0xf5   :  { %v268_v29 = vpop.f32.mrb[3].mxu1 }
 0x16e   :  { %v211_v30 = vpop.f32.mrb[0].mxu0 }
 0x16f   :  { %v212_v31 = vadd.f32 %v211_v30, %v122_v26  ;;  %v287_v32 = vpop.f32.mrb[1].mxu0 }
 0x170   :  { %v214_v33 = vpop.f32.mrb[2].mxu0 }
 0x171   :  { %218 = vst [vmem:[#allocation5] sm:$0xff] %v212_v31  ;;  %v215_v34 = vadd.f32 %v214_v33, %v125_v28  ;;  %v288_v35 = vpop.f32.mrb[3].mxu0 }
 0x173   :  { %219 = vst [vmem:[#allocation5 + $0x8] sm:$0xff] %v215_v34 }
 0x174   :  { %343 = shalt.err (!%p340_p12)
}
 0x175   :  { %s344_s7 = scalar_lea.hbm %s424_s3, 256 }
 0x176   :  { %p345_p13 = scmp.ne.s32.totalorder %s424_s3, %s344_s7  ;;  %p348_p0 = scmp.lt.u32.totalorder %s344_s7, %s424_s3 }
 0x178   :  { %p350_p1 = pnand %p348_p0, %p345_p13 }
 0x17a   :  { %353 = shalt.err (!%p350_p1)
}
 0x17b   :  { %s366_s12 = smov 128   ;;  %s367_s13 = smov 8  }
 0x17c   :  { %231 = dma.vmem_to_hbm [thread:$0]  %s226_s2, 256, %s424_s3, [#allocation4], %s366_s12, %s366_s12, %s367_s13  }
 0x17d   :  { %356 = dma.done.wait [#allocation4], 256  }
 0x17e   :  { %357 = vsyncadd [#allocation4], 4294967040 }
 0x17f   :  { %235 = vsyncpa [#allocation3], 1 }
 0x180   :  { %236 = vsyncpa [#allocation4], 1 }

</bundles_post_ra>
